<compile_context>
chip_gen: v6e
topology: v6e:2x2x1
jax: 0.10.0
libtpu: 0.0.40
codegen_flags: <defaults>
</compile_context>

<pallas_src>
import math

import jax
import jax.numpy as jnp
from jax.experimental import pallas as pl
from jax.experimental.pallas import tpu as pltpu


def make_sinusoidal_pe(max_len, d_model, dtype=jnp.float32):
    """Exactly mirrors the PyTorch PositionalEncoding.__init__ buffer."""
    position = jnp.arange(max_len, dtype=jnp.float32)[:, None]                # (L, 1)
    div_term = jnp.exp(
        jnp.arange(0, d_model, 2, dtype=jnp.float32) * (-math.log(10000.0) / d_model)
    )                                                                          # (D/2,)
    ang = position * div_term                                                  # (L, D/2)
    pe = jnp.zeros((max_len, d_model), dtype=jnp.float32)
    pe = pe.at[:, 0::2].set(jnp.sin(ang))
    pe = pe.at[:, 1::2].set(jnp.cos(ang))
    return pe.astype(dtype)


def _add_pe_kernel(x_ref, pe_ref, o_ref):
    # x_ref:  (TB, TF) block of the flattened input
    # pe_ref: (1,  TF) block of the flattened pe table (broadcast over TB)
    # o_ref:  (TB, TF) output block (aliased with the input block)
    o_ref[...] = x_ref[...] + pe_ref[...]


def _round_up(x, m):
    return ((x + m - 1) // m) * m


def _vmem_budget_bytes():
    # v7x has only 64 MiB physical VMEM per TensorCore; v5e/v6e have 128 MiB.
    # Keep ~25% headroom for compiler scratch / semaphores / double buffers.
    try:
        phys = int(pltpu.get_tpu_info().vmem_capacity_bytes)
    except Exception:
        phys = 64 * 1024 * 1024  # conservative default: assume v7x
    return min(phys * 3 // 4, 100 * 1024 * 1024)


def positional_encoding(x, pe, *, force_pallas=False):
    """x: (B, S, D); pe: (max_len, D) -> (B, S, D) == x + pe[None, :S, :]."""
    B, S, D = x.shape
    assert pe.shape[0] >= S and pe.shape[1] == D, "pe table too small for seq_len"

    itemsize = jnp.dtype(x.dtype).itemsize
    F = S * D
    pe_slice = pe[:S].astype(x.dtype)               # match activation dtype

    # Tiny inputs: kernel-launch + per-step overhead dominates; fused XLA add wins.
    if not force_pallas and B * F * itemsize < (1 << 20):
        return x + pe_slice[None, :, :]

    vmem_limit = _vmem_budget_bytes()
    # Budget: ~2x x-block + 2x out-block + pe row under the scoped limit.
    # 2-8 MiB blocks amortize the ~0.35 us/step pipeline overhead on all gens.
    target_block_bytes = max(512 * 1024, min(8 * 1024 * 1024, vmem_limit // 6))

    # Sublane (second-last dim) tile: match dtype packing (8 f32 / 16 bf16 / 32 i8).
    sublane = {4: 8, 2: 16, 1: 32}.get(itemsize, 8)
    if B <= 256 or B % sublane != 0:
        TB = B                    # full batch extent: always a legal block dim
    else:
        TB = 256                  # aligned for every supported dtype packing

    # Lane axis: flatten (S, D) -> F, pad to a multiple of the tile so every
    # store is a full, unmasked 128-lane vst (important for small D like 32).
    tf_cap = max(128, (target_block_bytes // (TB * itemsize)) // 128 * 128)
    TF = min(tf_cap, _round_up(F, 128))
    F_pad = _round_up(F, TF)

    x2 = x.reshape(B, F)
    pe2 = pe_slice.reshape(1, F)
    if F_pad != F:
        x2 = jnp.pad(x2, ((0, 0), (0, F_pad - F)))
        pe2 = jnp.pad(pe2, ((0, 0), (0, F_pad - F)))

    nb = pl.cdiv(B, TB)
    nf = F_pad // TF
    # Batch-tile axis innermost (fastest varying): pe block index (0, jf) stays
    # constant across consecutive steps, so its re-DMA is skipped.
    grid = (nf, nb)

    cost = pl.CostEstimate(
        flops=B * F,                                   # one add per element
        transcendentals=0,                             # sin/cos precomputed outside
        bytes_accessed=itemsize * (2 * B * F_pad + F_pad),
    )

    out2 = pl.pallas_call(
        _add_pe_kernel,
        out_shape=jax.ShapeDtypeStruct((B, F_pad), x.dtype),
        grid_spec=pltpu.PrefetchScalarGridSpec(
            num_scalar_prefetch=0,
            grid=grid,
            in_specs=[
                pl.BlockSpec((TB, TF), lambda jf, ib: (ib, jf)),   # x tile
                pl.BlockSpec((1, TF), lambda jf, ib: (0, jf)),     # pe tile (resident over ib)
            ],
            out_specs=pl.BlockSpec((TB, TF), lambda jf, ib: (ib, jf)),
        ),
        compiler_params=pltpu.CompilerParams(
            # Pure elementwise: both grid axes independent -> megacore-shardable.
            dimension_semantics=("parallel", "parallel"),
            vmem_limit_bytes=vmem_limit,
        ),
        cost_estimate=cost,
        input_output_aliases={0: 0},   # in-place residual-style add
    )(x2, pe2)

    if F_pad != F:
        out2 = out2[:, :F]
    return out2.reshape(B, S, D)


if __name__ == "__main__":
    # Small shapes consistent with the module's forward: (batch, seq, d_model).
    d_model = 32
    max_len = 512
    batch = 2
    seq = 8

    key = jax.random.PRNGKey(0)
    x = jax.random.normal(key, (batch, seq, d_model), dtype=jnp.float32)
    pe = make_sinusoidal_pe(max_len, d_model)

    # Force the Pallas path even at demo size so the kernel itself is exercised.
    out = positional_encoding(x, pe, force_pallas=True)
    out = jax.block_until_ready(out)
    ref = x + pe[None, :seq, :]
    assert out.shape == (batch, seq, d_model)
    assert jnp.allclose(out, ref, atol=1e-6), "mismatch vs reference x + pe"

    # Second small case exercising the lane-dense tiling path (F = 8192).
    key2 = jax.random.PRNGKey(1)
    x_b = jax.random.normal(key2, (4, 64, 128), dtype=jnp.float32)
    pe_b = make_sinusoidal_pe(max_len, 128)
    out_b = jax.block_until_ready(positional_encoding(x_b, pe_b, force_pallas=True))
    assert jnp.allclose(out_b, x_b + pe_b[None, :64, :], atol=1e-6)

    # Tiny-shape fast path (bypasses pallas) must also match.
    out_fp = jax.block_until_ready(positional_encoding(x, pe))
    assert jnp.allclose(out_fp, ref, atol=1e-6)

    print("KERNEL_OK")
</pallas_src>

<mosaic_0001>
module attributes {stable_mosaic.version = 11 : i64} {
  func.func @_add_pe_kernel(%arg0: i32, %arg1: i32, %arg2: memref<2x256xf32, #tpu.memory_space<vmem>>, %arg3: memref<1x256xf32, #tpu.memory_space<vmem>>, %arg4: memref<2x256xf32, #tpu.memory_space<vmem>>) attributes {dimension_semantics = [#tpu.dimension_semantics<parallel>, #tpu.dimension_semantics<parallel>], iteration_bounds = array<i64: 1, 1>, scalar_prefetch = 0 : i64, scratch_operands = 0 : i64, tpu.core_type = #tpu.core_type<tc>, window_params = [{transform_indices = @transform_0, window_bounds = array<i64: 2, 256>}, {transform_indices = @transform_1, window_bounds = array<i64: 1, 256>}, {transform_indices = @transform_2, window_bounds = array<i64: 2, 256>}]} {
    %c0 = arith.constant 0 : index
    %c0_0 = arith.constant 0 : index
    %0 = vector.load %arg2[%c0, %c0_0] : memref<2x256xf32, #tpu.memory_space<vmem>>, vector<2x256xf32>
    %c0_1 = arith.constant 0 : index
    %c0_2 = arith.constant 0 : index
    %1 = vector.load %arg3[%c0_1, %c0_2] : memref<1x256xf32, #tpu.memory_space<vmem>>, vector<1x256xf32>
    %2 = vector.broadcast %1 : vector<1x256xf32> to vector<2x256xf32>
    %3 = arith.addf %0, %2 : vector<2x256xf32>
    %c0_3 = arith.constant 0 : index
    %c0_4 = arith.constant 0 : index
    %4 = vector.load %arg4[%c0_3, %c0_4] : memref<2x256xf32, #tpu.memory_space<vmem>>, vector<2x256xf32>
    tpu.vector_store %arg4[%c0_3, %c0_4], %3 {strides = array<i32>} : memref<2x256xf32, #tpu.memory_space<vmem>>, vector<2x256xf32>,
    return
  }
  func.func @transform_0(%arg0: i32, %arg1: i32) -> (i32, i32) {
    %c0_i32 = arith.constant 0 : i32
    return %arg1, %arg0 : i32, i32
  }
  func.func @transform_1(%arg0: i32, %arg1: i32) -> (i32, i32) {
    %c0_i32 = arith.constant 0 : i32
    %c0_i32_0 = arith.constant 0 : i32
    return %c0_i32, %arg0 : i32, i32
  }
  func.func @transform_2(%arg0: i32, %arg1: i32) -> (i32, i32) {
    %c0_i32 = arith.constant 0 : i32
    return %arg1, %arg0 : i32, i32
  }
}

</mosaic_0001>

<bundles_post_ra>
// kernel: tpu_custom_call.1
= control target key start
LH: loop header
LB: loop body
LE: loop exit
PB: predicated region body
PF: predicated region fallthrough
CT: control target
= control target key end

     0   :  { %7 = vsyncpa [#allocation3], 0  ;;  %s135_s0 = inlined_call_operand.hbm [shape: f32[2,256], index: 0, kind: input, shape index: {}, may-alias: {0,2}]   ;;  %s136_s1 = inlined_call_operand.vmem [shape: f32[1,256], index: 1, kind: input, shape index: {}]   ;;  %s137_s2 = inlined_call_operand.hbm [shape: f32[2,256], index: 2, kind: output, shape index: {}, may-alias: {0,2}]  }
   0x1   :  { %8 = vsyncpa [#allocation4], 0  ;;  %s108_s9 = smov [#allocation2]  }
   0x2   :  { %s15_s10 = sshll.u32 %s108_s9, 4  ;;  %s16_s10 = int_to_ptr.vmem [resolvable:$true] %s15_s10 }
   0x3   :  { %s72_s11 = scalar_lea.vmem %s16_s10, 64  ;;  %p77_p1 = scmp.lt.s32.totalorder %s16_s10, %s16_s10 }
   0x4   :  { %p73_p0 = scmp.ne.s32.totalorder %s16_s10, %s72_s11  ;;  %p78_p2 = scmp.lt.s32.totalorder %s72_s11, %s72_s11 }
   0x6   :  { %p79_p3 = por %p78_p2, %p77_p1 }
   0x8   :  { %p80_p4 = pnand %p79_p3, %p73_p0 }
   0xa   :  { %83 = shalt.err (!%p80_p4)
}
   0xb   :  { %18 = dma.hbm_to_vmem [thread:$0]  %s135_s0, 64, %s16_s10, [#allocation3]  }
   0xc   :  { %104 = dma.done.wait [#allocation3], 64  }
   0xd   :  { %105 = vsyncadd [#allocation3], 4294967232  ;;  %v27_v0 = vlaneseq  ;;  %v109_v1 = vmov 1983009808   ;;  %v25_v7 = vld [vmem:[%s136_s1] sm:$0x3] }
   0xe   :  { %v37_v2 = vunpack.c.l.s4 %v109_v1  ;;  %v24_v12 = vld [vmem:[#allocation2] sm:$0xf]  ;;  %s110_s16 = smov [#allocation5]  }
   0xf   :  { %v28_v3 = vshrl.u32 %v27_v0, 7  ;;  %s52_s0 = sshll.u32 %s110_s16, 4  ;;  %s53_s0 = int_to_ptr.vmem [resolvable:$true] %s52_s0 }
  0x10   :  { %v38_v6 = vunpack.c.0.s8 %v37_v2  ;;  %s84_s17 = scalar_lea.vmem %s53_s0, 64  ;;  %p89_p6 = scmp.lt.s32.totalorder %s53_s0, %s53_s0 }
  0x11   :  { %v29_v4 = vsub.s32 0, %v28_v3  ;;  %v33_v5 = vsub.s32 1, %v28_v3  ;;  %p85_p5 = scmp.ne.s32.totalorder %s53_s0, %s84_s17  ;;  %p90_p7 = scmp.lt.s32.totalorder %s84_s17, %s84_s17 }
  0x12   :  { %v41_v10 = vsub.s32 %v38_v6, %v28_v3 }
  0x13   :  { %v30_v8 = vrot.slane %v25_v7, %v29_v4  ;;  %v34_v9 = vrot.slane %v25_v7, %v33_v5  ;;  %p91_p8 = por %p90_p7, %p89_p6 }
  0x15   :  { %v35_v11 = vcombine.low %v30_v8, %v34_v9  ;;  %p92_p9 = pnand %p91_p8, %p85_p5 }
  0x17   :  { %v42_v13 = vrot.slane %v35_v11, %v41_v10 }
  0x19   :  { %v44_v14 = vadd.f32 %v42_v13, %v24_v12 }
  0x1b   :  { %45 = vst [vmem:[#allocation5] sm:$0xf] %v44_v14 }
  0x1c   :  { %95 = shalt.err (!%p92_p9)
}
  0x1d   :  { %55 = dma.vmem_to_hbm [thread:$0]  %s53_s0, 64, %s137_s2, [#allocation4]  }
  0x1e   :  { %106 = dma.done.wait [#allocation4], 64  }
  0x1f   :  { %107 = vsyncadd [#allocation4], 4294967232 }
  0x20   :  { %59 = vsyncpa [#allocation3], 1 }
  0x21   :  { %60 = vsyncpa [#allocation4], 1 }

</bundles_post_ra>
